<compile_context>
chip_gen: v6e
topology: v6e:2x2x1
jax: 0.10.0
libtpu: 0.0.40
codegen_flags: <defaults>
</compile_context>

<pallas_src>
import jax
import jax.numpy as jnp
from jax.experimental import pallas as pl
from jax.experimental.pallas import tpu as pltpu

FEAT = 256          # in = out = 256
NEG_SLOPE = 0.01    # default negative_slope of nn.LeakyReLU
BN_EPS = 1e-5
MAX_TB = 2048       # batch-tile cap (multiple of 256); see VMEM note above.


def gf_kernel(x_ref, w_ref, shift_ref, o_ref):
    # In-kernel f32 -> bf16 cast of the activation tile, bf16 x bf16 matmul on
    # the MXU, f32 accumulation.
    x_bf = x_ref[...].astype(jnp.bfloat16)
    acc = jnp.dot(x_bf, w_ref[...], preferred_element_type=jnp.float32)
    # Folded (Linear bias + BatchNorm) affine shift, then LeakyReLU — all f32.
    y = acc + shift_ref[...]
    o_ref[...] = jnp.maximum(y, NEG_SLOPE * y).astype(o_ref.dtype)


def _choose_tb(batch):
    """Pick a batch tile: fill the MXU / amortize grid overhead, fit VMEM."""
    if batch <= 512:
        # Tiny batch: a single grid step covering the whole batch
        # (rounded up to the f32 sublane multiple of 8).
        return ((batch + 7) // 8) * 8
    # Large batch: at least 2 grid steps (so both v7x TensorCores get work),
    # tile a multiple of 256 and capped at MAX_TB, sized so grid*tb tracks B
    # and the masked tail of the ragged last block stays small.
    grid = max(2, (batch + MAX_TB - 1) // MAX_TB)
    per_step = (batch + grid - 1) // grid
    return min(MAX_TB, ((per_step + 255) // 256) * 256)


def gf_forward(x, w_t, bias, gamma, beta, running_mean, running_var, *, tb=None):
    """x: (B, 256) float32.  w_t: (256, 256) already transposed to (in, out)."""
    B, F = x.shape
    assert F == FEAT

    # --- host-side folding (plain JAX glue, trace-time only) ---------------
    scale = gamma / jnp.sqrt(running_var + BN_EPS)                 # (256,)
    w_folded = (w_t * scale[None, :]).astype(jnp.bfloat16)         # (256, 256)
    shift = ((bias - running_mean) * scale + beta).astype(jnp.float32)
    shift_2d = shift.reshape(1, FEAT)

    # --- tiling (no padding: Pallas masks the ragged last block) -----------
    if tb is None:
        tb = _choose_tb(B)
    grid = pl.cdiv(B, tb)

    out = pl.pallas_call(
        gf_kernel,
        out_shape=jax.ShapeDtypeStruct((B, FEAT), jnp.float32),
        grid_spec=pltpu.PrefetchScalarGridSpec(
            num_scalar_prefetch=0,
            grid=(grid,),
            in_specs=[
                pl.BlockSpec((tb, FEAT), lambda i: (i, 0)),      # x tile (f32)
                pl.BlockSpec((FEAT, FEAT), lambda i: (0, 0)),    # folded weight (resident)
                pl.BlockSpec((1, FEAT), lambda i: (0, 0)),       # folded shift
            ],
            out_specs=pl.BlockSpec((tb, FEAT), lambda i: (i, 0)),
        ),
        compiler_params=pltpu.CompilerParams(
            dimension_semantics=("parallel",),
            vmem_limit_bytes=32 * 1024 * 1024,
        ),
    )(x, w_folded, shift_2d)

    # out.view(B, -1) — already (B, 256), so this is a no-op reshape.
    return out.reshape(B, -1)


def _reference(x, w_t, bias, gamma, beta, running_mean, running_var):
    y = x @ w_t + bias
    y = (y - running_mean) / jnp.sqrt(running_var + BN_EPS) * gamma + beta
    return jnp.where(y > 0, y, NEG_SLOPE * y)


if __name__ == "__main__":
    key = jax.random.PRNGKey(0)
    kx, kw, kb, kg, kbeta, km, kv, kx2 = jax.random.split(key, 8)

    # Deterministic synthetic parameters (shapes from nn.Linear(256,256) /
    # nn.BatchNorm1d(256)).
    w_pt = jax.random.normal(kw, (FEAT, FEAT), dtype=jnp.float32) * 0.05  # (out, in)
    w_t = w_pt.T                                                          # (in, out)
    bias = jax.random.normal(kb, (FEAT,), dtype=jnp.float32) * 0.1
    gamma = 1.0 + 0.1 * jax.random.normal(kg, (FEAT,), dtype=jnp.float32)
    beta = 0.1 * jax.random.normal(kbeta, (FEAT,), dtype=jnp.float32)
    running_mean = 0.05 * jax.random.normal(km, (FEAT,), dtype=jnp.float32)
    running_var = jnp.abs(1.0 + 0.1 * jax.random.normal(kv, (FEAT,), dtype=jnp.float32))

    # Primary small-shape check (B=8 -> single grid step, full-batch tile).
    B = 8
    x = jax.random.normal(kx, (B, FEAT), dtype=jnp.float32)
    out = jax.block_until_ready(
        gf_forward(x, w_t, bias, gamma, beta, running_mean, running_var))
    ref = _reference(x, w_t, bias, gamma, beta, running_mean, running_var)
    assert out.shape == (B, FEAT)
    # bf16 matmul operands -> loosened tolerance vs the f32 reference.
    assert jnp.allclose(out, ref, atol=5e-2, rtol=5e-2), "mismatch vs reference (B=8)"

    # Ragged / multi-tile check: B=1030 -> tb=768, grid=2, unpadded input and
    # output, Pallas-masked partial last block.
    B2 = 1030
    x2 = jax.random.normal(kx2, (B2, FEAT), dtype=jnp.float32)
    out2 = jax.block_until_ready(
        gf_forward(x2, w_t, bias, gamma, beta, running_mean, running_var))
    ref2 = _reference(x2, w_t, bias, gamma, beta, running_mean, running_var)
    assert out2.shape == (B2, FEAT)
    assert jnp.allclose(out2, ref2, atol=5e-2, rtol=5e-2), "mismatch vs reference (ragged B)"

    print("KERNEL_OK")
</pallas_src>

<mosaic_0001>
module attributes {stable_mosaic.version = 11 : i64} {
  func.func @gf_kernel(%arg0: i32, %arg1: memref<8x256xf32, #tpu.memory_space<vmem>>, %arg2: memref<256x256xbf16, #tpu.memory_space<vmem>>, %arg3: memref<1x256xf32, #tpu.memory_space<vmem>>, %arg4: memref<8x256xf32, #tpu.memory_space<vmem>>) attributes {dimension_semantics = [#tpu.dimension_semantics<parallel>], iteration_bounds = array<i64: 1>, scalar_prefetch = 0 : i64, scratch_operands = 0 : i64, tpu.core_type = #tpu.core_type<tc>, window_params = [{transform_indices = @transform_0, window_bounds = array<i64: 8, 256>}, {pipeline_mode = #tpu.pipeline_mode<synchronous>, transform_indices = @transform_1, window_bounds = array<i64: 256, 256>}, {pipeline_mode = #tpu.pipeline_mode<synchronous>, transform_indices = @transform_2, window_bounds = array<i64: 1, 256>}, {transform_indices = @transform_3, window_bounds = array<i64: 8, 256>}]} {
    %c0 = arith.constant 0 : index
    %c0_0 = arith.constant 0 : index
    %0 = vector.load %arg1[%c0, %c0_0] : memref<8x256xf32, #tpu.memory_space<vmem>>, vector<8x256xf32>
    %1 = arith.truncf %0 : vector<8x256xf32> to vector<8x256xbf16>
    %c0_1 = arith.constant 0 : index
    %c0_2 = arith.constant 0 : index
    %2 = vector.load %arg2[%c0_1, %c0_2] : memref<256x256xbf16, #tpu.memory_space<vmem>>, vector<256x256xbf16>
    %cst = arith.constant dense<0.000000e+00> : vector<8x256xf32>
    %3 = tpu.matmul %1, %2, %cst {dimension_numbers = #tpu.dot_dimension_numbers<[1], [0], [0], [1], [0, 0, 1, 1], [], []>} : vector<8x256xbf16>, vector<256x256xbf16>, vector<8x256xf32> -> vector<8x256xf32>
    %c0_3 = arith.constant 0 : index
    %c0_4 = arith.constant 0 : index
    %4 = vector.load %arg3[%c0_3, %c0_4] : memref<1x256xf32, #tpu.memory_space<vmem>>, vector<1x256xf32>
    %5 = vector.broadcast %4 : vector<1x256xf32> to vector<8x256xf32>
    %6 = arith.addf %3, %5 : vector<8x256xf32>
    %cst_5 = arith.constant 0.00999999977 : f32
    %7 = vector.broadcast %cst_5 : f32 to vector<8x256xf32>
    %8 = arith.mulf %7, %6 : vector<8x256xf32>
    %9 = arith.maximumf %6, %8 : vector<8x256xf32>
    %c0_6 = arith.constant 0 : index
    %c0_7 = arith.constant 0 : index
    %10 = vector.load %arg4[%c0_6, %c0_7] : memref<8x256xf32, #tpu.memory_space<vmem>>, vector<8x256xf32>
    tpu.vector_store %arg4[%c0_6, %c0_7], %9 {strides = array<i32>} : memref<8x256xf32, #tpu.memory_space<vmem>>, vector<8x256xf32>,
    return
  }
  func.func @transform_0(%arg0: i32) -> (i32, i32) {
    %c0_i32 = arith.constant 0 : i32
    %c0_i32_0 = arith.constant 0 : i32
    return %arg0, %c0_i32 : i32, i32
  }
  func.func @transform_1(%arg0: i32) -> (i32, i32) {
    %c0_i32 = arith.constant 0 : i32
    %c0_i32_0 = arith.constant 0 : i32
    %c0_i32_1 = arith.constant 0 : i32
    return %c0_i32, %c0_i32_0 : i32, i32
  }
  func.func @transform_2(%arg0: i32) -> (i32, i32) {
    %c0_i32 = arith.constant 0 : i32
    %c0_i32_0 = arith.constant 0 : i32
    %c0_i32_1 = arith.constant 0 : i32
    return %c0_i32, %c0_i32_0 : i32, i32
  }
  func.func @transform_3(%arg0: i32) -> (i32, i32) {
    %c0_i32 = arith.constant 0 : i32
    %c0_i32_0 = arith.constant 0 : i32
    return %arg0, %c0_i32 : i32, i32
  }
}

</mosaic_0001>

<bundles_post_ra>
// kernel: tpu_custom_call.1
= control target key start
LH: loop header
LB: loop body
LE: loop exit
PB: predicated region body
PF: predicated region fallthrough
CT: control target
= control target key end

     0   :  { %8 = vsyncpa [#allocation3], 0  ;;  %s500_s0 = inlined_call_operand.hbm [shape: f32[8,256], index: 0, kind: input, shape index: {}]   ;;  %s501_s1 = inlined_call_operand.hbm [shape: bf16[256,256], index: 1, kind: input, shape index: {}]   ;;  %s502_s2 = inlined_call_operand.vmem [shape: f32[1,256], index: 2, kind: input, shape index: {}]   ;;  %s503_s3 = inlined_call_operand.hbm [shape: f32[8,256], index: 3, kind: output, shape index: {}]  }
   0x1   :  { %9 = vsyncpa [#allocation6], 0 }
   0x2   :  { %10 = vsyncpa [#allocation4], 0  ;;  %s463_s12 = smov [#allocation2]   ;;  %s464_s14 = smov [#allocation5]  }
   0x3   :  { %s17_s13 = sshll.u32 %s463_s12, 4  ;;  %s26_s15 = sshll.u32 %s464_s14, 4  ;;  %s18_s13 = int_to_ptr.vmem [resolvable:$true] %s17_s13  ;;  %s27_s15 = int_to_ptr.vmem [resolvable:$true] %s26_s15 }
   0x4   :  { %s405_s16 = scalar_lea.vmem %s18_s13, 256  ;;  %p410_p1 = scmp.lt.s32.totalorder %s18_s13, %s18_s13 }
   0x5   :  { %p406_p0 = scmp.ne.s32.totalorder %s18_s13, %s405_s16  ;;  %p411_p2 = scmp.lt.s32.totalorder %s405_s16, %s405_s16 }
   0x7   :  { %p412_p3 = por %p411_p2, %p410_p1 }
   0x9   :  { %p413_p4 = pnand %p412_p3, %p406_p0 }
   0xb   :  { %416 = shalt.err (!%p413_p4)
}
   0xc   :  { %20 = dma.hbm_to_vmem [thread:$0]  %s500_s0, 256, %s18_s13, [#allocation3]  }
   0xd   :  { %s425_s19 = scalar_lea.vmem %s27_s15, 4096  ;;  %p430_p6 = scmp.lt.s32.totalorder %s27_s15, %s27_s15 }
   0xe   :  { %p426_p5 = scmp.ne.s32.totalorder %s27_s15, %s425_s19  ;;  %p431_p7 = scmp.lt.s32.totalorder %s425_s19, %s425_s19 }
  0x10   :  { %p432_p8 = por %p431_p7, %p430_p6 }
  0x12   :  { %p433_p9 = pnand %p432_p8, %p426_p5 }
  0x14   :  { %436 = shalt.err (!%p433_p9)
}
  0x15   :  { %s465_s20 = smov 128   ;;  %s466_s21 = smov 8  }
  0x16   :  { %32 = dma.hbm_to_vmem [thread:$0]  %s501_s1, 4096, %s27_s15, [#allocation6], %s465_s20, %s465_s20, %s466_s21  }
  0x17   :  { %457 = dma.done.wait [#allocation3], 256  }
  0x18   :  { %458 = vsyncadd [#allocation3], 4294967040 }
  0x19   :  { %459 = dma.done.wait [#allocation6], 4096  }
  0x1a   :  { %460 = vsyncadd [#allocation6], 4294963200  ;;  %v349_v0 = vld [vmem:[#allocation5 + $0x74] ss:$8 sps:$4 sm:$0xff]   ;;  %v351_v1 = vld [vmem:[#allocation5 + $0x70] ss:$8 sps:$4 sm:$0xff]   ;;  %v79_v36 = vlaneseq }
  0x1b   :  { %249 = vmatprep.subr.bf16.mxu0 %v349_v0  ;;  %v352_v2 = vld [vmem:[#allocation5 + $0x64] ss:$8 sps:$4 sm:$0xff]   ;;  %v354_v3 = vld [vmem:[#allocation5 + $0x60] ss:$8 sps:$4 sm:$0xff]   ;;  %v355_v4 = vld [vmem:[#allocation5 + $0x54] ss:$8 sps:$4 sm:$0xff]  }
  0x1c   :  { %250 = vmatpush1.bf16.msra.mxu0 %v351_v1  ;;  %v357_v5 = vld [vmem:[#allocation5 + $0x50] ss:$8 sps:$4 sm:$0xff]   ;;  %v358_v6 = vld [vmem:[#allocation5 + $0x44] ss:$8 sps:$4 sm:$0xff]   ;;  %v360_v7 = vld [vmem:[#allocation5 + $0x40] ss:$8 sps:$4 sm:$0xff]  }
  0x1d   :  { %251 = vmatprep.subr.bf16.mxu0 %v352_v2  ;;  %v361_v8 = vld [vmem:[#allocation5 + $0x34] ss:$8 sps:$4 sm:$0xff]   ;;  %v363_v9 = vld [vmem:[#allocation5 + $0x30] ss:$8 sps:$4 sm:$0xff]   ;;  %v364_v10 = vld [vmem:[#allocation5 + $0x24] ss:$8 sps:$4 sm:$0xff]  }
  0x1e   :  { %v366_v11 = vld [vmem:[#allocation5 + $0x20] ss:$8 sps:$4 sm:$0xff]   ;;  %v367_v12 = vld [vmem:[#allocation5 + $0x14] ss:$8 sps:$4 sm:$0xff]   ;;  %v369_v15 = vld [vmem:[#allocation5 + $0x10] ss:$8 sps:$4 sm:$0xff]  }
  0x1f   :  { %v42_v13 = vld [vmem:[#allocation2 + $0x8] sm:$0xff]  ;;  %v370_v16 = vld [vmem:[#allocation5 + $0x4] ss:$8 sps:$4 sm:$0xff]   ;;  %v372_v17 = vld [vmem:[#allocation5] ss:$8 sps:$4 sm:$0xff]   ;;  %v80_v37 = vshrl.u32 %v79_v36, 7 }
  0x20   :  { %252 = vmatpush1.bf16.msra.mxu0 %v354_v3  ;;  %v44_v14 = vpack.c.bf16 %v42_v13, %v42_v13  ;;  %v373_v18 = vld [vmem:[#allocation5 + $0xf4] ss:$8 sps:$4 sm:$0xff]   ;;  %v375_v19 = vld [vmem:[#allocation5 + $0xf0] ss:$8 sps:$4 sm:$0xff]   ;;  %v376_v20 = vld [vmem:[#allocation5 + $0xe4] ss:$8 sps:$4 sm:$0xff]  }
  0x21   :  { %253 = vmatprep.subr.bf16.mxu0 %v355_v4  ;;  %v378_v21 = vld [vmem:[#allocation5 + $0xe0] ss:$8 sps:$4 sm:$0xff]   ;;  %v379_v22 = vld [vmem:[#allocation5 + $0xd4] ss:$8 sps:$4 sm:$0xff]   ;;  %v381_v23 = vld [vmem:[#allocation5 + $0xd0] ss:$8 sps:$4 sm:$0xff]  }
  0x22   :  { %281 = vmatprep.mubr.bf16.mxu0 %v44_v14  ;;  %v382_v24 = vld [vmem:[#allocation5 + $0xc4] ss:$8 sps:$4 sm:$0xff]   ;;  %v384_v25 = vld [vmem:[#allocation5 + $0xc0] ss:$8 sps:$4 sm:$0xff]   ;;  %v385_v26 = vld [vmem:[#allocation5 + $0xb4] ss:$8 sps:$4 sm:$0xff]  }
  0x23   :  { %v387_v27 = vld [vmem:[#allocation5 + $0xb0] ss:$8 sps:$4 sm:$0xff]   ;;  %v388_v28 = vld [vmem:[#allocation5 + $0xa4] ss:$8 sps:$4 sm:$0xff]   ;;  %v390_v29 = vld [vmem:[#allocation5 + $0xa0] ss:$8 sps:$4 sm:$0xff]  }
  0x24   :  { %254 = vmatpush1.bf16.msra.mxu0 %v357_v5  ;;  %v391_v30 = vld [vmem:[#allocation5 + $0x94] ss:$8 sps:$4 sm:$0xff]   ;;  %v393_v31 = vld [vmem:[#allocation5 + $0x90] ss:$8 sps:$4 sm:$0xff]   ;;  %v394_v32 = vld [vmem:[#allocation5 + $0x84] ss:$8 sps:$4 sm:$0xff]  }
  0x25   :  { %255 = vmatprep.subr.bf16.mxu0 %v358_v6  ;;  %v396_v33 = vld [vmem:[#allocation5 + $0x80] ss:$8 sps:$4 sm:$0xff]   ;;  %v41_v34 = vld [vmem:[#allocation2] sm:$0xff]  ;;  %v81_v38 = vsub.s32 0, %v80_v37  ;;  %v85_v40 = vsub.s32 1, %v80_v37  ;;  %s467_s24 = smov [#allocation7]  }
  0x26   :  { %v43_v35 = vpack.c.bf16 %v41_v34, %v41_v34  ;;  %v77_v39 = vld [vmem:[%s502_s2] sm:$0x3]  ;;  %s302_s25 = sshll.u32 %s467_s24, 4  ;;  %s303_s25 = int_to_ptr.vmem [resolvable:$true] %s302_s25 }
  0x27   :  { %v82_v41 = vrot.slane %v77_v39, %v81_v38  ;;  %v86_v42 = vrot.slane %v77_v39, %v85_v40  ;;  %s437_s26 = scalar_lea.vmem %s303_s25, 256  ;;  %p442_p11 = scmp.lt.s32.totalorder %s303_s25, %s303_s25 }
  0x28   :  { %256 = vmatpush1.bf16.msra.mxu0 %v360_v7  ;;  %p438_p10 = scmp.ne.s32.totalorder %s303_s25, %s437_s26  ;;  %p443_p12 = scmp.lt.s32.totalorder %s437_s26, %s437_s26 }
  0x29   :  { %257 = vmatprep.subr.bf16.mxu0 %v361_v8 }
  0x2a   :  { %p444_p13 = por %p443_p12, %p442_p11 }
  0x2c   :  { %258 = vmatpush1.bf16.msra.mxu0 %v363_v9  ;;  %p445_p0 = pnand %p444_p13, %p438_p10 }
  0x2d   :  { %259 = vmatprep.subr.bf16.mxu0 %v364_v10 }
  0x30   :  { %260 = vmatpush1.bf16.msra.mxu0 %v366_v11 }
  0x31   :  { %261 = vmatprep.subr.bf16.mxu0 %v367_v12 }
  0x34   :  { %262 = vmatpush1.bf16.msra.mxu0 %v369_v15 }
  0x35   :  { %263 = vmatprep.subr.bf16.mxu0 %v370_v16 }
  0x38   :  { %264 = vmatpush1.bf16.msra.mxu0 %v372_v17 }
  0x39   :  { %265 = vmatprep.subr.bf16.mxu0 %v373_v18 }
  0x3c   :  { %266 = vmatpush2.bf16.msra.mxu0 %v375_v19 }
  0x3d   :  { %267 = vmatprep.subr.bf16.mxu0 %v376_v20 }
  0x40   :  { %268 = vmatpush2.bf16.msra.mxu0 %v378_v21 }
  0x41   :  { %269 = vmatprep.subr.bf16.mxu0 %v379_v22 }
  0x44   :  { %270 = vmatpush2.bf16.msra.mxu0 %v381_v23 }
  0x45   :  { %271 = vmatprep.subr.bf16.mxu0 %v382_v24 }
  0x48   :  { %272 = vmatpush2.bf16.msra.mxu0 %v384_v25 }
  0x49   :  { %273 = vmatprep.subr.bf16.mxu0 %v385_v26 }
  0x4c   :  { %274 = vmatpush2.bf16.msra.mxu0 %v387_v27 }
  0x4d   :  { %275 = vmatprep.subr.bf16.mxu0 %v388_v28 }
  0x50   :  { %276 = vmatpush2.bf16.msra.mxu0 %v390_v29 }
  0x51   :  { %277 = vmatprep.subr.bf16.mxu0 %v391_v30 }
  0x54   :  { %278 = vmatpush2.bf16.msra.mxu0 %v393_v31 }
  0x55   :  { %279 = vmatprep.subr.bf16.mxu0 %v394_v32 }
  0x58   :  { %280 = vmatpush2.bf16.msra.mxu0 %v396_v33 }
  0x5b   :  { %282 = vmatmul.mubr.bf16.vlgmr.msra.gmra.mxu0 %v43_v35 }
 0x11b   :  { %v283_v43 = vpop.f32.mrf.mxu0 }
 0x11c   :  { %v284_v44 = vadd.f32 %v283_v43, %v82_v41 }
 0x11d   :  { %v285_v45 = vpop.f32.mrf.mxu0 }
 0x11e   :  { %v290_v46 = vmul.f32 0.01, %v284_v44  ;;  %v286_v47 = vadd.f32 %v285_v45, %v86_v42 }
 0x11f   :  { %v287_v48 = vpop.f32.mrf.mxu0 }
 0x120   :  { %v292_v49 = vmax.f32 %v284_v44, %v290_v46  ;;  %v291_v50 = vmul.f32 0.01, %v286_v47 }
 0x121   :  { %v288_v51 = vpop.f32.mrf.mxu0 }
 0x122   :  { %294 = vst [vmem:[#allocation7] sm:$0xff] %v292_v49  ;;  %v293_v52 = vmax.f32 %v286_v47, %v291_v50 }
 0x124   :  { %295 = vst [vmem:[#allocation7 + $0x8] sm:$0xff] %v293_v52 }
 0x125   :  { %448 = shalt.err (!%p445_p0)
}
 0x126   :  { %305 = dma.vmem_to_hbm [thread:$0]  %s303_s25, 256, %s503_s3, [#allocation4]  }
 0x127   :  { %461 = dma.done.wait [#allocation4], 256  }
 0x128   :  { %462 = vsyncadd [#allocation4], 4294967040 }
 0x129   :  { %309 = vsyncpa [#allocation3], 1 }
 0x12a   :  { %310 = vsyncpa [#allocation6], 1 }
 0x12b   :  { %311 = vsyncpa [#allocation4], 1 }

</bundles_post_ra>
